<compile_context>
chip_gen: v7x
topology: tpu7x:2x2x1
jax: 0.10.0
libtpu: 0.0.40
codegen_flags: <defaults>
</compile_context>

<pallas_src>
import jax
import jax.numpy as jnp
from jax.experimental import pallas as pl
from jax.experimental.pallas import tpu as pltpu


def _pool_kernel(x_ref, o_ref):
    # x_ref: (TR, hw) tile in VMEM. Reduce over the lane (last) axis.
    x = x_ref[...]
    hw = x.shape[-1]
    # f32 accumulation for the sum (no full-tile astype), native-dtype max.
    s = jnp.sum(x, axis=-1, keepdims=True, dtype=jnp.float32)
    mx = jnp.max(x, axis=-1, keepdims=True).astype(jnp.float32)
    o_ref[...] = (0.5 * (s * (1.0 / hw) + mx)).astype(o_ref.dtype)


def _round_up(v, m):
    return (v + m - 1) // m * m


def pooling_forward(x):
    """x: (N, C, H, W) -> (N, C, 1, 1); 0.5 * (global avg pool + global max pool)."""
    n, c, h, w = x.shape
    rows = n * c
    hw = h * w
    x2d = x.reshape(rows, hw)

    itemsize = jnp.dtype(x.dtype).itemsize

    # Generation-aware VMEM budget: ~1/4 of physical VMEM for the
    # double-buffered input tile (v5e/v6e: 128 MiB -> 32 MiB, v7x: 64 -> 16).
    try:
        vmem_cap = int(pltpu.get_tpu_info().vmem_capacity_bytes)
    except Exception:
        vmem_cap = 64 << 20  # conservative (v7x-sized) fallback
    input_budget = vmem_cap // 4

    # Largest multiple-of-8 row tile whose double-buffered input fits the
    # budget, clamped to the (rounded-up) row count.
    tr_fit = max(8, (input_budget // (2 * hw * itemsize)) // 8 * 8)
    tr = int(min(tr_fit, _round_up(rows, 8)))
    # TODO(synk): for extreme spatial extents where even an 8-row tile blows
    # the VMEM budget, add a second "arbitrary" grid axis over hw with f32
    # sum/max scratch accumulators (init at k==0, finalize at k==last).

    grid = (pl.cdiv(rows, tr),)

    out2d = pl.pallas_call(
        _pool_kernel,
        out_shape=jax.ShapeDtypeStruct((rows, 1), x.dtype),
        grid_spec=pl.GridSpec(
            grid=grid,
            # Last block dim equals the full array dim (hw / 1), row tile is a
            # multiple of 8 -> satisfies the (8, 128) tiling constraint.
            in_specs=[pl.BlockSpec((tr, hw), lambda i: (i, 0))],
            out_specs=pl.BlockSpec((tr, 1), lambda i: (i, 0)),
        ),
        compiler_params=pltpu.CompilerParams(
            # Rows are fully independent -> shard across TensorCores on v7x;
            # neutral on single-TC v5e/v6e.
            dimension_semantics=("parallel",),
            # Raise the scoped VMEM limit above the v5e/v6e defaults so the
            # double-buffered tiles fit; stays within physical VMEM on v7x.
            vmem_limit_bytes=int(vmem_cap // 2),
        ),
    )(x2d)

    return out2d.reshape(n, c, 1, 1)


if __name__ == "__main__":
    key = jax.random.PRNGKey(0)
    # Small NCHW input consistent with the module's forward.
    x = jax.random.normal(key, (2, 4, 16, 16), dtype=jnp.float32)

    out = pooling_forward(x)
    out = jax.block_until_ready(out)

    # Sanity check against a plain-JAX reference.
    ref = 0.5 * (
        jnp.mean(x, axis=(2, 3), keepdims=True)
        + jnp.max(x, axis=(2, 3), keepdims=True)
    )
    assert out.shape == (2, 4, 1, 1)
    assert jnp.allclose(out, ref, atol=1e-5, rtol=1e-5)

    print("KERNEL_OK")
</pallas_src>

<mosaic_0001>
module attributes {stable_mosaic.version = 11 : i64} {
  func.func @_pool_kernel(%arg0: i32, %arg1: memref<8x256xf32, #tpu.memory_space<vmem>>, %arg2: memref<8x1xf32, #tpu.memory_space<vmem>>) attributes {dimension_semantics = [#tpu.dimension_semantics<parallel>], iteration_bounds = array<i64: 1>, scalar_prefetch = 0 : i64, scratch_operands = 0 : i64, tpu.core_type = #tpu.core_type<tc>, window_params = [{transform_indices = @transform_0, window_bounds = array<i64: 8, 256>}, {transform_indices = @transform_1, window_bounds = array<i64: 8, 1>}]} {
    %c0 = arith.constant 0 : index
    %c0_0 = arith.constant 0 : index
    %0 = vector.load %arg1[%c0, %c0_0] : memref<8x256xf32, #tpu.memory_space<vmem>>, vector<8x256xf32>
    %cst = arith.constant dense<0.000000e+00> : vector<8xf32>
    %1 = vector.multi_reduction <add>, %0, %cst [1] : vector<8x256xf32> to vector<8xf32>
    %2 = vector.shape_cast %1 : vector<8xf32> to vector<8x1xf32>
    %cst_1 = arith.constant dense<0xFF800000> : vector<8xf32>
    %3 = vector.multi_reduction <maximumf>, %0, %cst_1 [1] : vector<8x256xf32> to vector<8xf32>
    %4 = vector.shape_cast %3 : vector<8xf32> to vector<8x1xf32>
    %cst_2 = arith.constant 3.906250e-03 : f32
    %5 = vector.broadcast %cst_2 : f32 to vector<8x1xf32>
    %6 = arith.mulf %2, %5 : vector<8x1xf32>
    %7 = arith.addf %6, %4 : vector<8x1xf32>
    %cst_3 = arith.constant 5.000000e-01 : f32
    %8 = vector.broadcast %cst_3 : f32 to vector<8x1xf32>
    %9 = arith.mulf %8, %7 : vector<8x1xf32>
    %c0_4 = arith.constant 0 : index
    %c0_5 = arith.constant 0 : index
    %10 = vector.load %arg2[%c0_4, %c0_5] : memref<8x1xf32, #tpu.memory_space<vmem>>, vector<8x1xf32>
    tpu.vector_store %arg2[%c0_4, %c0_5], %9 {strides = array<i32>} : memref<8x1xf32, #tpu.memory_space<vmem>>, vector<8x1xf32>,
    return
  }
  func.func @transform_0(%arg0: i32) -> (i32, i32) {
    %c0_i32 = arith.constant 0 : i32
    %c0_i32_0 = arith.constant 0 : i32
    return %arg0, %c0_i32 : i32, i32
  }
  func.func @transform_1(%arg0: i32) -> (i32, i32) {
    %c0_i32 = arith.constant 0 : i32
    %c0_i32_0 = arith.constant 0 : i32
    return %arg0, %c0_i32 : i32, i32
  }
}

</mosaic_0001>

<bundles_post_ra>
// kernel: tpu_custom_call.1
= control target key start
LH: loop header
LB: loop body
LE: loop exit
PB: predicated region body
PF: predicated region fallthrough
CT: control target
= control target key end

     0   :  { %6 = vsyncpa [#allocation3], 0  ;;  %s63_s6 = smov [#allocation2]   ;;  %s89_s0 = inlined_call_operand.hbm [shape: f32[8,256], index: 0, kind: input, shape index: {}]   ;;  %s90_s1 = inlined_call_operand.vmem [shape: f32[8,1], index: 1, kind: output, shape index: {}]  }
   0x1   :  { %s13_s7 = sshll.u32 %s63_s6, 4  ;;  %s39_s10 = scalar_lea.hbm %s89_s0, 256  ;;  %s14_s7 = int_to_ptr.vmem [resolvable:$true] %s13_s7 }
   0x2   :  { %p40_p0 = scmp.ne.s32.totalorder %s89_s0, %s39_s10  ;;  %p43_p1 = scmp.lt.u32.totalorder %s39_s10, %s89_s0 }
   0x4   :  { %p45_p2 = pnand %p43_p1, %p40_p0 }
   0x6   :  { %48 = shalt.err (!%p45_p2)
}
   0x7   :  { %s49_s15 = scalar_lea.vmem %s14_s7, 256  ;;  %p54_p4 = scmp.lt.s32.totalorder %s14_s7, %s14_s7 }
   0x8   :  { %p50_p3 = scmp.ne.s32.totalorder %s14_s7, %s49_s15  ;;  %p55_p5 = scmp.lt.s32.totalorder %s49_s15, %s49_s15 }
   0xa   :  { %p56_p6 = por %p55_p5, %p54_p4 }
   0xc   :  { %p57_p7 = pnand %p56_p6, %p50_p3 }
   0xe   :  { %60 = shalt.err (!%p57_p7)
}
   0xf   :  { %16 = dma.hbm_to_vmem [thread:$0]  %s89_s0, 256, %s14_s7, [#allocation3]  }
  0x10   :  { %61 = dma.done.wait [#allocation3], 256  }
  0x11   :  { %62 = vsyncadd [#allocation3], 4294967040  ;;  %v20_v0 = vld [vmem:[#allocation2] sm:$0xff]  ;;  %v21_v1 = vld [vmem:[#allocation2 + $0x8] sm:$0xff]  ;;  %vm31_vm0 = vcmask 7168  }
  0x12   :  { %v22_v2 = vadd.f32 %v21_v1, %v20_v0  ;;  %v25_v3 = vmax.f32 %v20_v0, %v21_v1 }
  0x14   :  { %23 = vadd.xlane.f32.xlu0 %v22_v2 }
  0x18   :  { %26 = vmax.xlane.f32.xlu0 %v25_v3 }
  0xa1   :  { %v24_v4 = vpop.xlane.xlu0 %23 }
  0xa2   :  { %v28_v5 = vmul.f32 0.00390625, %v24_v4 }
  0xa5   :  { %v27_v6 = vpop.xlane.xlu0 %26 }
  0xa6   :  { %v29_v7 = vadd.f32 %v28_v5, %v27_v6 }
  0xa8   :  { %v30_v8 = vmul.f32 0.5, %v29_v7 }
  0xaa   :  { %32 = vst.msk [vmem:[%s90_s1] sm:$0xff] %vm31_vm0, %v30_v8 }
  0xab   :  { %37 = vsyncpa [#allocation3], 1 }

</bundles_post_ra>
